<compile_context>
chip_gen: v7x
topology: tpu7x:2x2x1
jax: 0.10.0
libtpu: 0.0.40
codegen_flags: <defaults>
</compile_context>

<pallas_src>
import jax
import jax.numpy as jnp
from jax.experimental import pallas as pl
from jax.experimental.pallas import tpu as pltpu


# ----------------------------------------------------------------------------
# Fused kernel: 3x3 conv (3 row-shifted matmuls) -> ReLU -> 1x1 conv -> ReLU
# All activations lane-dense (rows = H on sublanes, W*C on lanes).
# ----------------------------------------------------------------------------
def _make_fused_bbneck_kernel(wc_in, matmul_dtype):
    def kernel(x_ref, w1_ref, b1_ref, w2_ref, b2_ref, o_ref):
        # x_ref  : (1, H, W*Cin)        f32, one image
        # w1_ref : (3, W*Cin, W*Cmid)   block-Toeplitz 3x3 weights (bf16)
        # b1_ref : (1, W*Cmid)          f32 (bias tiled over W)
        # w2_ref : (W*Cmid, W*Cout)     block-diagonal 1x1 weights (bf16)
        # b2_ref : (1, W*Cout)          f32 (bias tiled over W)
        # o_ref  : (1, H, W*Cout)       f32 lane-dense output slab
        x = x_ref[0].astype(matmul_dtype)                      # (H, W*Cin)
        zrow = jnp.zeros((1, wc_in), matmul_dtype)
        x_dn = jnp.concatenate([zrow, x[:-1, :]], axis=0)      # rows h-1 (dy=0)
        x_up = jnp.concatenate([x[1:, :], zrow], axis=0)       # rows h+1 (dy=2)

        # Backbone 3x3 conv: three MXU matmuls, f32 accumulation in vregs.
        acc = jnp.dot(x_dn, w1_ref[0], preferred_element_type=jnp.float32)
        acc += jnp.dot(x, w1_ref[1], preferred_element_type=jnp.float32)
        acc += jnp.dot(x_up, w1_ref[2], preferred_element_type=jnp.float32)
        feats = jnp.maximum(acc + b1_ref[...], 0.0)            # (H, W*Cmid) f32

        # Neck 1x1 conv: one matmul, fused — feats never leaves VMEM.
        y = jnp.dot(feats.astype(matmul_dtype), w2_ref[...],
                    preferred_element_type=jnp.float32)
        y = jnp.maximum(y + b2_ref[...], 0.0)                  # (H, W*Cout) f32

        # Lane-dense store (last dim W*Cout is a multiple of 128 -> unmasked).
        o_ref[0] = y

    return kernel


# ----------------------------------------------------------------------------
# Wrapper-side weight packing (done once, outside the grid)
# ----------------------------------------------------------------------------
def _pack_bb_weights(w3, W, matmul_dtype):
    # w3: (3, 3, Cin, Cmid) HWIO -> (3, W*Cin, W*Cmid) block-Toeplitz per dy.
    # Horizontal padding is absorbed by the band structure (out-of-range
    # columns simply have zero weight blocks).
    taps = []
    for dy in range(3):
        m = sum(jnp.kron(jnp.eye(W, k=1 - dx, dtype=w3.dtype), w3[dy, dx])
                for dx in range(3))
        taps.append(m)
    return jnp.stack(taps).astype(matmul_dtype)


def _pack_neck_weights(w, W, matmul_dtype):
    # w: (Cmid, Cout) -> block-diagonal (W*Cmid, W*Cout).
    return jnp.kron(jnp.eye(W, dtype=w.dtype), w).astype(matmul_dtype)


# ----------------------------------------------------------------------------
# BBNeck forward: feats = bb(x); return neck(feats)
# ----------------------------------------------------------------------------
def bb_neck_forward(x_nchw, params, matmul_dtype=jnp.bfloat16):
    x = jnp.transpose(x_nchw, (0, 2, 3, 1))                    # NCHW -> NHWC
    N, H, W, Cin = x.shape
    Cmid = params["bb_w"].shape[-1]
    Cout = params["neck_w"].shape[-1]
    x = x.reshape(N, H, W * Cin)                                # lane-dense rows

    w1 = _pack_bb_weights(params["bb_w"], W, matmul_dtype)      # (3, WCi, WCm)
    w2 = _pack_neck_weights(params["neck_w"], W, matmul_dtype)  # (WCm, WCo)
    b1 = jnp.tile(params["bb_b"].astype(jnp.float32), (1, W))   # (1, WCm)
    b2 = jnp.tile(params["neck_b"].astype(jnp.float32), (1, W)) # (1, WCo)

    out = pl.pallas_call(
        _make_fused_bbneck_kernel(W * Cin, matmul_dtype),
        out_shape=jax.ShapeDtypeStruct((N, H, W * Cout), jnp.float32),
        grid=(N,),
        in_specs=[
            pl.BlockSpec((1, H, W * Cin), lambda n: (n, 0, 0)),
            pl.BlockSpec((3, W * Cin, W * Cmid), lambda n: (0, 0, 0)),
            pl.BlockSpec((1, W * Cmid), lambda n: (0, 0)),
            pl.BlockSpec((W * Cmid, W * Cout), lambda n: (0, 0)),
            pl.BlockSpec((1, W * Cout), lambda n: (0, 0)),
        ],
        out_specs=pl.BlockSpec((1, H, W * Cout), lambda n: (n, 0, 0)),
        compiler_params=pltpu.CompilerParams(
            dimension_semantics=("parallel",)),  # v7x: batch split across TCs
    )(x, w1, b1, w2, b2)

    out = out.reshape(N, H, W, Cout)                             # un-slab
    return jnp.transpose(out, (0, 3, 1, 2))                      # NHWC -> NCHW


# ----------------------------------------------------------------------------
# Pure-JAX reference (full f32) for the correctness check
# ----------------------------------------------------------------------------
def _reference(x_nchw, params):
    x = jnp.transpose(x_nchw, (0, 2, 3, 1))
    f = jax.lax.conv_general_dilated(
        x, params["bb_w"], window_strides=(1, 1), padding="SAME",
        dimension_numbers=("NHWC", "HWIO", "NHWC"))
    f = jnp.maximum(f + params["bb_b"][0], 0.0)
    y = jnp.einsum("nhwc,cd->nhwd", f, params["neck_w"]) + params["neck_b"][0]
    y = jnp.maximum(y, 0.0)
    return jnp.transpose(y, (0, 3, 1, 2))


if __name__ == "__main__":
    # Small shapes consistent with the module's conv-style forward.
    N, Cin, H, W = 2, 4, 16, 16
    Cmid, Cout = 8, 16

    key = jax.random.PRNGKey(0)
    k_x, k_w1, k_b1, k_w2, k_b2 = jax.random.split(key, 5)

    x = jax.random.normal(k_x, (N, Cin, H, W), jnp.float32)

    params = {
        # backbone 3x3 conv weights, HWIO
        "bb_w": 0.1 * jax.random.normal(k_w1, (3, 3, Cin, Cmid), jnp.float32),
        "bb_b": 0.1 * jax.random.normal(k_b1, (1, Cmid), jnp.float32),
        # neck 1x1 conv weights
        "neck_w": 0.1 * jax.random.normal(k_w2, (Cmid, Cout), jnp.float32),
        "neck_b": 0.1 * jax.random.normal(k_b2, (1, Cout), jnp.float32),
    }

    out = jax.block_until_ready(bb_neck_forward(x, params))

    ref = _reference(x, params)
    assert out.shape == (N, Cout, H, W)
    # bf16 matmul operands (f32 accumulation) -> loosened tolerance.
    assert jnp.allclose(out, ref, atol=5e-2, rtol=5e-2), "mismatch vs reference"

    print("KERNEL_OK")
</pallas_src>

<mosaic_0001>
module attributes {stable_mosaic.version = 11 : i64} {
  func.func @kernel(%arg0: i32, %arg1: memref<1x16x64xf32, #tpu.memory_space<vmem>>, %arg2: memref<3x64x128xbf16, #tpu.memory_space<vmem>>, %arg3: memref<1x128xf32, #tpu.memory_space<vmem>>, %arg4: memref<128x256xbf16, #tpu.memory_space<vmem>>, %arg5: memref<1x256xf32, #tpu.memory_space<vmem>>, %arg6: memref<1x16x256xf32, #tpu.memory_space<vmem>>) attributes {dimension_semantics = [#tpu.dimension_semantics<parallel>], iteration_bounds = array<i64: 2>, scalar_prefetch = 0 : i64, scratch_operands = 0 : i64, tpu.core_type = #tpu.core_type<tc>, window_params = [{transform_indices = @transform_0, window_bounds = array<i64: 1, 16, 64>}, {pipeline_mode = #tpu.pipeline_mode<synchronous>, transform_indices = @transform_1, window_bounds = array<i64: 3, 64, 128>}, {pipeline_mode = #tpu.pipeline_mode<synchronous>, transform_indices = @transform_2, window_bounds = array<i64: 1, 128>}, {pipeline_mode = #tpu.pipeline_mode<synchronous>, transform_indices = @transform_3, window_bounds = array<i64: 128, 256>}, {pipeline_mode = #tpu.pipeline_mode<synchronous>, transform_indices = @transform_4, window_bounds = array<i64: 1, 256>}, {transform_indices = @transform_5, window_bounds = array<i64: 1, 16, 256>}]} {
    %c0 = arith.constant 0 : index
    %c0_0 = arith.constant 0 : index
    %c0_1 = arith.constant 0 : index
    %0 = vector.load %arg1[%c0, %c0_0, %c0_1] : memref<1x16x64xf32, #tpu.memory_space<vmem>>, vector<1x16x64xf32>
    %1 = vector.shape_cast %0 : vector<1x16x64xf32> to vector<16x64xf32>
    %2 = arith.truncf %1 : vector<16x64xf32> to vector<16x64xbf16>
    %cst = arith.constant 0.000000e+00 : bf16
    %3 = vector.broadcast %cst : bf16 to vector<1x64xbf16>
    %4 = vector.extract_strided_slice %2 {offsets = [0, 0], sizes = [15, 64], strides = [1, 1]} : vector<16x64xbf16> to vector<15x64xbf16>
    %5 = tpu.concatenate %3, %4 in 0 : vector<1x64xbf16>, vector<15x64xbf16> -> vector<16x64xbf16>
    %6 = vector.extract_strided_slice %2 {offsets = [1, 0], sizes = [15, 64], strides = [1, 1]} : vector<16x64xbf16> to vector<15x64xbf16>
    %7 = tpu.concatenate %6, %3 in 0 : vector<15x64xbf16>, vector<1x64xbf16> -> vector<16x64xbf16>
    %c0_2 = arith.constant 0 : index
    %c0_3 = arith.constant 0 : index
    %c0_4 = arith.constant 0 : index
    %8 = vector.load %arg2[%c0_2, %c0_3, %c0_4] : memref<3x64x128xbf16, #tpu.memory_space<vmem>>, vector<1x64x128xbf16>
    %9 = vector.shape_cast %8 : vector<1x64x128xbf16> to vector<64x128xbf16>
    %cst_5 = arith.constant dense<0.000000e+00> : vector<16x128xf32>
    %10 = tpu.matmul %5, %9, %cst_5 {dimension_numbers = #tpu.dot_dimension_numbers<[1], [0], [0], [1], [0, 0, 1, 1], [], []>} : vector<16x64xbf16>, vector<64x128xbf16>, vector<16x128xf32> -> vector<16x128xf32>
    %c1 = arith.constant 1 : index
    %c0_6 = arith.constant 0 : index
    %c0_7 = arith.constant 0 : index
    %11 = vector.load %arg2[%c1, %c0_6, %c0_7] : memref<3x64x128xbf16, #tpu.memory_space<vmem>>, vector<1x64x128xbf16>
    %12 = vector.shape_cast %11 : vector<1x64x128xbf16> to vector<64x128xbf16>
    %cst_8 = arith.constant dense<0.000000e+00> : vector<16x128xf32>
    %13 = tpu.matmul %2, %12, %cst_8 {dimension_numbers = #tpu.dot_dimension_numbers<[1], [0], [0], [1], [0, 0, 1, 1], [], []>} : vector<16x64xbf16>, vector<64x128xbf16>, vector<16x128xf32> -> vector<16x128xf32>
    %14 = arith.addf %10, %13 : vector<16x128xf32>
    %c2 = arith.constant 2 : index
    %c0_9 = arith.constant 0 : index
    %c0_10 = arith.constant 0 : index
    %15 = vector.load %arg2[%c2, %c0_9, %c0_10] : memref<3x64x128xbf16, #tpu.memory_space<vmem>>, vector<1x64x128xbf16>
    %16 = vector.shape_cast %15 : vector<1x64x128xbf16> to vector<64x128xbf16>
    %cst_11 = arith.constant dense<0.000000e+00> : vector<16x128xf32>
    %17 = tpu.matmul %7, %16, %cst_11 {dimension_numbers = #tpu.dot_dimension_numbers<[1], [0], [0], [1], [0, 0, 1, 1], [], []>} : vector<16x64xbf16>, vector<64x128xbf16>, vector<16x128xf32> -> vector<16x128xf32>
    %18 = arith.addf %14, %17 : vector<16x128xf32>
    %c0_12 = arith.constant 0 : index
    %c0_13 = arith.constant 0 : index
    %19 = vector.load %arg3[%c0_12, %c0_13] : memref<1x128xf32, #tpu.memory_space<vmem>>, vector<1x128xf32>
    %20 = vector.broadcast %19 : vector<1x128xf32> to vector<16x128xf32>
    %21 = arith.addf %18, %20 : vector<16x128xf32>
    %cst_14 = arith.constant 0.000000e+00 : f32
    %22 = vector.broadcast %cst_14 : f32 to vector<16x128xf32>
    %23 = arith.maximumf %21, %22 : vector<16x128xf32>
    %24 = arith.truncf %23 : vector<16x128xf32> to vector<16x128xbf16>
    %c0_15 = arith.constant 0 : index
    %c0_16 = arith.constant 0 : index
    %25 = vector.load %arg4[%c0_15, %c0_16] : memref<128x256xbf16, #tpu.memory_space<vmem>>, vector<128x256xbf16>
    %cst_17 = arith.constant dense<0.000000e+00> : vector<16x256xf32>
    %26 = tpu.matmul %24, %25, %cst_17 {dimension_numbers = #tpu.dot_dimension_numbers<[1], [0], [0], [1], [0, 0, 1, 1], [], []>} : vector<16x128xbf16>, vector<128x256xbf16>, vector<16x256xf32> -> vector<16x256xf32>
    %c0_18 = arith.constant 0 : index
    %c0_19 = arith.constant 0 : index
    %27 = vector.load %arg5[%c0_18, %c0_19] : memref<1x256xf32, #tpu.memory_space<vmem>>, vector<1x256xf32>
    %28 = vector.broadcast %27 : vector<1x256xf32> to vector<16x256xf32>
    %29 = arith.addf %26, %28 : vector<16x256xf32>
    %cst_20 = arith.constant 0.000000e+00 : f32
    %30 = vector.broadcast %cst_20 : f32 to vector<16x256xf32>
    %31 = arith.maximumf %29, %30 : vector<16x256xf32>
    %c0_21 = arith.constant 0 : index
    %c0_22 = arith.constant 0 : index
    %c0_23 = arith.constant 0 : index
    %32 = vector.load %arg6[%c0_21, %c0_22, %c0_23] : memref<1x16x256xf32, #tpu.memory_space<vmem>>, vector<1x16x256xf32>
    %33 = vector.shape_cast %32 : vector<1x16x256xf32> to vector<16x256xf32>
    %34 = vector.shape_cast %31 : vector<16x256xf32> to vector<1x16x256xf32>
    tpu.vector_store %arg6[%c0_21, %c0_22, %c0_23], %34 {strides = array<i32>} : memref<1x16x256xf32, #tpu.memory_space<vmem>>, vector<1x16x256xf32>,
    return
  }
  func.func @transform_0(%arg0: i32) -> (i32, i32, i32) {
    %c0_i32 = arith.constant 0 : i32
    %c0_i32_0 = arith.constant 0 : i32
    %c0_i32_1 = arith.constant 0 : i32
    return %arg0, %c0_i32, %c0_i32_0 : i32, i32, i32
  }
  func.func @transform_1(%arg0: i32) -> (i32, i32, i32) {
    %c0_i32 = arith.constant 0 : i32
    %c0_i32_0 = arith.constant 0 : i32
    %c0_i32_1 = arith.constant 0 : i32
    %c0_i32_2 = arith.constant 0 : i32
    return %c0_i32, %c0_i32_0, %c0_i32_1 : i32, i32, i32
  }
  func.func @transform_2(%arg0: i32) -> (i32, i32) {
    %c0_i32 = arith.constant 0 : i32
    %c0_i32_0 = arith.constant 0 : i32
    %c0_i32_1 = arith.constant 0 : i32
    return %c0_i32, %c0_i32_0 : i32, i32
  }
  func.func @transform_3(%arg0: i32) -> (i32, i32) {
    %c0_i32 = arith.constant 0 : i32
    %c0_i32_0 = arith.constant 0 : i32
    %c0_i32_1 = arith.constant 0 : i32
    return %c0_i32, %c0_i32_0 : i32, i32
  }
  func.func @transform_4(%arg0: i32) -> (i32, i32) {
    %c0_i32 = arith.constant 0 : i32
    %c0_i32_0 = arith.constant 0 : i32
    %c0_i32_1 = arith.constant 0 : i32
    return %c0_i32, %c0_i32_0 : i32, i32
  }
  func.func @transform_5(%arg0: i32) -> (i32, i32, i32) {
    %c0_i32 = arith.constant 0 : i32
    %c0_i32_0 = arith.constant 0 : i32
    %c0_i32_1 = arith.constant 0 : i32
    return %arg0, %c0_i32, %c0_i32_0 : i32, i32, i32
  }
}

</mosaic_0001>

<bundles_post_ra>
// kernel: tpu_custom_call.1
= control target key start
LH: loop header
LB: loop body
LE: loop exit
PB: predicated region body
PF: predicated region fallthrough
CT: control target
= control target key end

     0   :  { %10 = vsyncpa [#allocation3], 0  ;;  %s1494_s0 = inlined_call_operand.hbm [shape: f32[2,16,64], index: 0, kind: input, shape index: {}]   ;;  %s1495_s1 = inlined_call_operand.hbm [shape: bf16[3,64,128], index: 1, kind: input, shape index: {}]   ;;  %s1496_s2 = inlined_call_operand.vmem [shape: f32[1,128], index: 2, kind: input, shape index: {}]   ;;  %s1497_s3 = inlined_call_operand.hbm [shape: bf16[128,256], index: 3, kind: input, shape index: {}]   ;;  %s1498_s4 = inlined_call_operand.vmem [shape: f32[1,256], index: 4, kind: input, shape index: {}]   ;;  %s1499_s5 = inlined_call_operand.hbm [shape: f32[2,16,256], index: 5, kind: output, shape index: {}]  }
   0x1   :  { %12 = vsyncpa [#allocation3 + $0x1], 0 }
   0x2   :  { %13 = vsyncpa [#allocation6], 0 }
   0x3   :  { %14 = vsyncpa [#allocation4], 0 }
   0x4   :  { %16 = vsyncpa [#allocation4 + $0x1], 0  ;;  %s1220_s18 = smov 0   ;;  %s1222_s19 = smov 0  }
   0x5   :  { %s1224_s20 = smov 0   ;;  %s1226_s21 = smov 0  }
   0x6 LB: > { %s1241_s22 = sadd.s32 4294967295, %s1175_s21   ;;  %s804_s23 = sadd.s32 4294967294, %s1175_s21   ;;  %s1175_s21 = sphi %s1226_s21, %s1521_s21   ;;  %s1171_s20 = sphi %s1224_s20, %s1520_s20   ;;  %s1167_s19 = sphi %s1222_s19, %s1519_s19   ;;  %s1163_s18 = sphi %s1220_s18, %s1518_s18  }
   0x7   : > { %p42_p0 = scmp.ne.s32.totalorder %s1167_s19, %s1163_s18  ;;  %p1500_p1 = scmp.eq.s32.totalorder %s1241_s22, 0 }
   0x8   : > { %p156_p3 = scmp.eq.s32.totalorder %s804_s23, 1  ;;  %p805_p5 = scmp.ge.s32.totalorder %s1175_s21, 1 }
   0x9   : > { %p1250_p4 = por %p1500_p1, %p42_p0  ;;  %p163_p7 = scmp.lt.s32.totalorder %s1175_s21, 3 }
   0xa   : > { %p1255_p6 = por %p156_p3, %p42_p0  ;;  %s1177_s27 = smov [#allocation5]  }
   0xb   : > { %s1503_s24 = scalar_select %p1250_p4, 1, 0 }
   0xc   : > { %s1504_s25 = scalar_select %p1255_p6, 1, 0 }
   0xd   : > { %p1260_p8 = pnand %p805_p5, %p163_p7  ;;  %s175_s28 = sshll.u32 %s1177_s27, 4  ;;  %s1264_s28 = int_to_ptr.vmem [resolvable:$true] %s175_s28 }
   0xe   : > { %s1178_s30 = smov [#allocation7]   ;;  %s1019_s9 = scalar_lea.hbm %s1495_s1, 1536 }
   0xf   : > { %p919_p9 = pneg %p1260_p8  ;;  %s191_s6 = sshll.u32 %s1178_s30, 4  ;;  %s1275_s6 = int_to_ptr.vmem [resolvable:$true] %s191_s6 }
  0x10   : > { %p1020_p12 = scmp.ne.s32.totalorder %s1495_s1, %s1019_s9  ;;  %p1026_p5 = scmp.lt.u32.totalorder %s1019_s9, %s1495_s1 }
  0x11   : > { %p1271_p11 = pnand %p919_p9, %p1500_p1 }
  0x13   : > { %p1021_p13 = pneg %p1271_p11 }
  0x15   : > { %p1022_p0 = pnand %p1021_p13, %p1020_p12 }
  0x17   : > { %p1023_p3 = pneg %p1022_p0 }
  0x19   : > { %p1028_p7 = pnand %p1026_p5, %p1023_p3 }
  0x1b   : > { %1031 = shalt.err (!%p1028_p7)
}
  0x1c   : > { %s1032_s14 = scalar_lea.vmem %s1264_s28, 1536  ;;  %p1040_p2 = scmp.lt.s32.totalorder %s1264_s28, %s1264_s28 }
  0x1d   : > { %p1033_p9 = scmp.ne.s32.totalorder %s1264_s28, %s1032_s14  ;;  %p1041_p12 = scmp.lt.s32.totalorder %s1032_s14, %s1032_s14 }
  0x1f   : > { %p1035_p10 = pnand %p1033_p9, %p1021_p13  ;;  %p1042_p0 = por %p1041_p12, %p1040_p2 }
  0x21   : > { %p1036_p1 = pneg %p1035_p10 }
  0x23   : > { %p1043_p6 = pnand %p1042_p0, %p1036_p1 }
  0x25   : > { %1046 = shalt.err (!%p1043_p6)
}
  0x26   : > { %s1179_s15 = smov 64   ;;  %s1180_s16 = smov 4  }
  0x27   : > { %922 = dma.hbm_to_vmem [thread:$0]  (!%p1271_p11), %s1495_s1, 1536, %s1264_s28, [#allocation6], %s1179_s15, %s1179_s15, %s1180_s16  }
  0x28   : > { %s1047_s7 = scalar_lea.hbm %s1497_s3, 2048 }
  0x29   : > { %p1048_p2 = scmp.ne.s32.totalorder %s1497_s3, %s1047_s7  ;;  %p1054_p10 = scmp.lt.u32.totalorder %s1047_s7, %s1497_s3 }
  0x2b   : > { %p1050_p1 = pnand %p1048_p2, %p1021_p13 }
  0x2d   : > { %p1051_p6 = pneg %p1050_p1 }
  0x2f   : > { %p1056_p3 = pnand %p1054_p10, %p1051_p6 }
  0x31   : > { %1059 = shalt.err (!%p1056_p3)
}
  0x32   : > { %s1060_s28 = scalar_lea.vmem %s1275_s6, 2048  ;;  %p1068_p12 = scmp.lt.s32.totalorder %s1275_s6, %s1275_s6 }
  0x33   : > { %p1061_p5 = scmp.ne.s32.totalorder %s1275_s6, %s1060_s28  ;;  %p1069_p0 = scmp.lt.s32.totalorder %s1060_s28, %s1060_s28 }
  0x35   : > { %p1063_p7 = pnand %p1061_p5, %p1021_p13  ;;  %p1070_p2 = por %p1069_p0, %p1068_p12 }
  0x37   : > { %p1064_p9 = pneg %p1063_p7 }
  0x39   : > { %p1071_p1 = pnand %p1070_p2, %p1064_p9 }
  0x3b   : > { %1074 = shalt.err (!%p1071_p1)
}
  0x3c   : > { %s1181_s12 = smov 128   ;;  %s1182_s13 = smov 8  }
  0x3d   : > { %925 = dma.hbm_to_vmem [thread:$0]  (!%p1271_p11), %s1497_s3, 2048, %s1275_s6, [#allocation6], %s1181_s12, %s1181_s12, %s1182_s13  }
  0x3e   : > { %s1333_s16 = sadd.s32 1, %s1175_s21   ;;  %s29_s23 = sadd.s32 1, %s1171_s20 }
  0x3f   : > { %s26_s17 = ssub.s32 %s1175_s21, %s1333_s16  ;;  %p36_p6 = scmp.ne.s32.totalorder %s1171_s20, %s1167_s19 }
  0x40   : > { %p27_p13 = scmp.eq.s32.totalorder %s26_s17, 0  ;;  %p37_p10 = scmp.eq.s32.totalorder %s1175_s21, 0 }
  0x41   : > { %p1507_p5 = scmp.eq.s32.totalorder %s1241_s22, 1  ;;  %p936_p9 = scmp.lt.s32.totalorder %s1175_s21, 2 }
  0x42   : > { %s1342_s27 = scalar_select %p27_p13, %s1171_s20, %s29_s23  }
  0x43   : > { %p38_p3 = por %p37_p10, %p36_p6  ;;  %p1346_p7 = por %p1507_p5, %p36_p6 }
  0x44   : > { %s208_s30 = sand.u32 1, %s1171_s20   ;;  %s854_s6 = sshll.u32 %s1175_s21, 8 }
  0x45   : > { %s1508_s29 = scalar_select %p1346_p7, 1, 0 }
  0x46   : > { %s809_s7 = sshll.u32 %s208_s30, 4  ;;  %s1356_s10 = scalar_lea.hbm %s1494_s0, %s854_s6 }
  0x47   : > { %s212_s11 = scalar_lea.vmem [#allocation2], %s809_s7  ;;  %p1360_p11 = pnand %p936_p9, %p38_p3 }
  0x48   : > { %s219_s28 = sshll.u32 %s212_s11, 4  ;;  %s1364_s15 = scalar_lea.sflag [#allocation3], %s208_s30  ;;  %s1358_s28 = int_to_ptr.vmem [resolvable:$true] %s219_s28 }
  0x49   : > { %s1075_s17 = scalar_lea.hbm %s1356_s10, 256  ;;  %p1077_p0 = pneg %p1360_p11 }
  0x4a   : > { %p1076_p12 = scmp.ne.s32.totalorder %s1356_s10, %s1075_s17  ;;  %s1080_s6 = scalar_lea.hbm %s1494_s0, 512 }
  0x4b   : > { %p1081_p13 = scmp.lt.u32.totalorder %s1356_s10, %s1494_s0  ;;  %p1082_p6 = scmp.lt.u32.totalorder %s1080_s6, %s1075_s17 }
  0x4c   : > { %p1078_p2 = pnand %p1077_p0, %p1076_p12  ;;  %p1084_p3 = scmp.lt.u32.totalorder %s1075_s17, %s1356_s10 }
  0x4d   : > { %p1083_p10 = por %p1082_p6, %p1081_p13 }
  0x4e   : > { %p1079_p1 = pneg %p1078_p2 }
  0x4f   : > { %p1085_p5 = por %p1084_p3, %p1083_p10 }
  0x51   : > { %p1086_p9 = pnand %p1085_p5, %p1079_p1 }
  0x53   : > { %1089 = shalt.err (!%p1086_p9)
}
  0x54   : > { %s1090_s30 = scalar_lea.vmem %s1358_s28, 256  ;;  %s1183_s11 = smov [#allocation2]  }
  0x55   : > { %p1091_p12 = scmp.ne.s32.totalorder %s1358_s28, %s1090_s30  ;;  %s1095_s23 = sshll.u32 %s1183_s11, 4  ;;  %s1096_s23 = int_to_ptr.vmem [resolvable:$false] %s1095_s23 }
  0x56   : > { %s1097_s7 = scalar_lea.vmem %s1096_s23, 512  ;;  %p1098_p4 = scmp.lt.s32.totalorder %s1358_s28, %s1096_s23 }
  0x57   : > { %p1093_p2 = pnand %p1091_p12, %p1077_p0  ;;  %p1099_p13 = scmp.lt.s32.totalorder %s1097_s7, %s1090_s30 }
  0x59   : > { %p1094_p7 = pneg %p1093_p2  ;;  %p1100_p6 = por %p1099_p13, %p1098_p4 }
  0x5b   : > { %p1101_p10 = pnand %p1100_p6, %p1094_p7 }
  0x5d   : > { %1104 = shalt.err (!%p1101_p10)
}
  0x5e   : > { %929 = dma.hbm_to_vmem [thread:$0]  (!%p1360_p11), %s1356_s10, 256, %s1358_s28, %s1364_s15, %s1181_s12, %s1181_s12, %s1182_s13  }
  0x5f   : > { %231 = sbr.rel (%p1260_p8) target bundleno = 596 (0x254), region = 40  ;;  %s1398_s17 = sand.u32 (!%p1260_p8), 1, %s1167_s19  }
  0x60   : > { %s813_s6 = sshll.u32 (!%p1260_p8), %s1398_s17, 4  ;;  %s234_s8 = scalar_lea.sflag (!%p1260_p8), [#allocation3], %s1398_s17 }
  0x61   : > { %s237_s9 = scalar_lea.vmem (!%p1260_p8), [#allocation2], %s813_s6  ;;  %p1510_p4 = scmp.ne.s32.totalorder (!%p1260_p8), %s1503_s24, 0 }
  0x66   : > { %1150 = dma.done.wait (%p1510_p4), %s234_s8, 256  }
  0x67   : > { %1152 = vsyncadd (%p1510_p4), %s234_s8, 4294967040  ;;  %p1511_p7 = scmp.eq.s32.totalorder %s1241_s22, 0 }
  0x69   : > { %1154 = dma.done.wait (%p1511_p7), [#allocation6], 3584   ;;  %p1512_p11 = pmov %p1511_p7 }
  0x6a   : > { %v1184_v0 = vmov 0.0   ;;  %vm1185_vm0 = vmmov 0   ;;  %v983_v1 = vld [vmem:[#allocation5 + $0x20] sm:$0xff]   ;;  %v985_v3 = vld [vmem:[#allocation5 + $0x28] sm:$0xff]   ;;  %v987_v5 = vld [vmem:[#allocation5 + $0x30] sm:$0xff]   ;;  %vm284_vm1 = vcmask 1040384  }
  0x6b   : > { %1156 = vsyncadd (%p1512_p11), [#allocation6], 4294963712  ;;  %871 = vmatprep.subr.bf16.mxu0 %v1184_v0  ;;  %883 = vmatprep.subr.bf16.mxu1 %v1184_v0  ;;  %v984_v2 = vld [vmem:[#allocation5] sm:$0xff]   ;;  %v986_v4 = vld [vmem:[#allocation5 + $0x8] sm:$0xff]   ;;  %vm285_vm2 = vsmask.f32 256 }
  0x6c   : > { %879 = vmatprep.mubr.msk.bf16.mxu0 %vm1185_vm0, %v1184_v0  ;;  %891 = vmatprep.mubr.msk.bf16.mxu1 %vm1185_vm0, %v1184_v0  ;;  %v988_v6 = vld [vmem:[#allocation5 + $0x10] sm:$0xff]   ;;  %v274_v8 = vld [vmem:[%s237_s9 + $0x8] sm:$0xff]  ;;  %vm1421_vm3 = vmand %vm284_vm1, %vm285_vm2  ;;  %vm336_vm4 = vcmask 523264   ;;  %vm291_vm5 = vcmask 1047552   ;;  %vm292_vm6 = vsmask.f32 7424 }
  0x6d   : > { %872 = vmatpush3.bf16.msra.mxu0 %v983_v1  ;;  %884 = vmatpush3.bf16.msra.mxu1 %v984_v2  ;;  %v273_v7 = vld [vmem:[%s237_s9] sm:$0xff]  ;;  %v989_v10 = vld [vmem:[#allocation5 + $0x38] sm:$0xff]   ;;  %v992_v21 = vld [vmem:[#allocation5 + $0x48] sm:$0xff]   ;;  %v1186_v41 = vmov 0   ;;  %s816_s10 = sshll.u32 %s1398_s17, 5  ;;  %s855_s15 = sshll.u32 %s1241_s22, 9 }
  0x6e   : > { %873 = vmatprep.subr.bf16.mxu0 %v1184_v0  ;;  %885 = vmatprep.subr.bf16.mxu1 %v1184_v0  ;;  %v275_v9 = vpack.c.bf16 %v274_v8, %v273_v7  ;;  %v990_v11 = vld [vmem:[#allocation5 + $0x18] sm:$0xff]   ;;  %v991_v16 = vld [vmem:[#allocation5 + $0x40] sm:$0xff]   ;;  %v993_v25 = vld [vmem:[#allocation5 + $0x50] sm:$0xff]   ;;  %s271_s28 = scalar_lea.vmem [#allocation8], %s816_s10  ;;  %s1450_s23 = scalar_lea.hbm %s1499_s5, %s855_s15 }
  0x6f   : > { %v995_v17 = vld [vmem:[#allocation7] ss:$8 sps:$4 sm:$0xff]   ;;  %v997_v18 = vld [vmem:[#allocation7 + $0x4] ss:$8 sps:$4 sm:$0xff]   ;;  %v1000_v20 = vld [vmem:[#allocation7 + $0x14] ss:$8 sps:$4 sm:$0xff]  }
  0x70   : > { %v277_v12 = vshrl.u32 %v275_v9, 16  ;;  %v280_v13 = vshll.u32 %v275_v9, 16  ;;  %v998_v23 = vld [vmem:[#allocation7 + $0x10] ss:$8 sps:$4 sm:$0xff]   ;;  %vm293_vm7 = vmand %vm291_vm5, %vm292_vm6  ;;  %v1003_v29 = vld [vmem:[#allocation7 + $0x24] ss:$8 sps:$4 sm:$0xff]  }
  0x71   : > { %874 = vmatpush3.bf16.msra.mxu0 %v985_v3  ;;  %886 = vmatpush3.bf16.msra.mxu1 %v986_v4  ;;  %v994_v26 = vld [vmem:[#allocation5 + $0x58] sm:$0xff]   ;;  %v1001_v30 = vld [vmem:[#allocation7 + $0x20] ss:$8 sps:$4 sm:$0xff]   ;;  %v1009_v33 = vld [vmem:[#allocation7 + $0x44] ss:$8 sps:$4 sm:$0xff]   ;;  %s712_s14 = sshll.u32 %s271_s28, 4  ;;  %s1445_s14 = int_to_ptr.vmem [resolvable:$true] %s712_s14 }
  0x72   : > { %875 = vmatprep.subr.bf16.mxu0 %v1184_v0  ;;  %887 = vmatprep.subr.bf16.mxu1 %v1184_v0  ;;  %v279_v15 = vrot.slane %v277_v12, 7  ;;  %v288_v24 = vrot.slane %v280_v13, 1  ;;  %v1006_v31 = vld [vmem:[#allocation7 + $0x34] ss:$8 sps:$4 sm:$0xff]   ;;  %v1004_v32 = vld [vmem:[#allocation7 + $0x30] ss:$8 sps:$4 sm:$0xff]  }
  0x73   : > { %v1007_v34 = vld [vmem:[#allocation7 + $0x40] ss:$8 sps:$4 sm:$0xff]   ;;  %v1012_v35 = vld [vmem:[#allocation7 + $0x54] ss:$8 sps:$4 sm:$0xff]   ;;  %v1010_v36 = vld [vmem:[#allocation7 + $0x50] ss:$8 sps:$4 sm:$0xff]  }
  0x74   : > { %v282_v19 = vor.u32 %v280_v13, %v279_v15  ;;  %v289_v27 = vor.u32 %v288_v24, %v277_v12  ;;  %v1015_v37 = vld [vmem:[#allocation7 + $0x64] ss:$8 sps:$4 sm:$0xff]   ;;  %v1013_v38 = vld [vmem:[#allocation7 + $0x60] ss:$8 sps:$4 sm:$0xff]   ;;  %v1018_v39 = vld [vmem:[#allocation7 + $0x74] ss:$8 sps:$4 sm:$0xff]  }
  0x75   : > { %876 = vmatpush3.bf16.msra.mxu0 %v987_v5  ;;  %888 = vmatpush3.bf16.msra.mxu1 %v988_v6  ;;  %v1016_v40 = vld [vmem:[#allocation7 + $0x70] ss:$8 sps:$4 sm:$0xff]   ;;  %v832_v53 = vld [vmem:[%s1496_s2] ss:$0 sm:$0xff]  ;;  %s699_s22 = scalar_lea.sflag [#allocation4], %s1398_s17  ;;  %s1105_s7 = scalar_lea.vmem %s1445_s14, 512 }
  0x76   : > { %877 = vmatprep.subr.bf16.mxu0 %v1184_v0  ;;  %889 = vmatprep.subr.bf16.mxu1 %v1184_v0  ;;  %v287_v22 = vsel %vm1421_vm3, 0, %v282_v19  ;;  %v294_v28 = vsel %vm293_vm7, %v289_v27, 0  ;;  %v555_v3 = vld [vmem:[%s1498_s4] sm:$0x3]  ;;  %p1106_p8 = scmp.ne.s32.totalorder %s1445_s14, %s1105_s7  ;;  %p1515_p0 = scmp.ne.s32.totalorder %s1508_s29, 0 }
  0x77   : > { %s1187_s6 = smov [#allocation8]  }
  0x78   : > { %p1107_p1 = pnand %p1106_p8, %p1515_p0  ;;  %s1109_s8 = sshll.u32 %s1187_s6, 4  ;;  %s1110_s8 = int_to_ptr.vmem [resolvable:$false] %s1109_s8 }
  0x79   : > { %878 = vmatpush3.bf16.msra.mxu0 %v989_v10  ;;  %890 = vmatpush3.bf16.msra.mxu1 %v990_v11  ;;  %s1111_s9 = scalar_lea.vmem %s1110_s8, 1024  ;;  %p1112_p5 = scmp.lt.s32.totalorder %s1445_s14, %s1110_s8 }
  0x7a   : > { %895 = vmatprep.subr.bf16.mxu0 %v1184_v0  ;;  %647 = vmatprep.subr.bf16.mxu1 %v997_v18  ;;  %p1108_p3 = pneg %p1107_p1  ;;  %p1113_p9 = scmp.lt.s32.totalorder %s1111_s9, %s1105_s7 }
  0x7c   : > { %880 = vmatmul.mubr.msk.bf16.vlgmr.msra.gmra.mrb[0].mxu0 %vm336_vm4, %v275_v9  ;;  %892 = vmatmul.mubr.msk.bf16.vlgmr.msra.gmra.mrb[0].mxu1 %vm336_vm4, %v287_v22  ;;  %p1114_p12 = por %p1113_p9, %p1112_p5 }
  0x7d   : > { %896 = vmatpush3.bf16.msra.mxu0 %v991_v16  ;;  %903 = vmatprep.mubr.msk.bf16.mxu0 %vm1185_vm0, %v1184_v0 }
  0x7e   : > { %897 = vmatprep.subr.bf16.mxu0 %v1184_v0  ;;  %648 = vmatpush1.bf16.msra.mxu1 %v995_v17  ;;  %p1115_p2 = pnand %p1114_p12, %p1108_p3 }
  0x7f   : > { %649 = vmatprep.subr.bf16.mxu1 %v1000_v20  ;;  %679 = vmatprep.mubr.bf16.mxu1 %v1186_v41 }
  0x81   : > { %898 = vmatpush3.bf16.msra.mxu0 %v992_v21 }
  0x82   : > { %899 = vmatprep.subr.bf16.mxu0 %v1184_v0  ;;  %650 = vmatpush1.bf16.msra.mxu1 %v998_v23 }
  0x83   : > { %651 = vmatprep.subr.bf16.mxu1 %v1003_v29 }
  0x85   : > { %900 = vmatpush3.bf16.msra.mxu0 %v993_v25 }
  0x86   : > { %901 = vmatprep.subr.bf16.mxu0 %v1184_v0  ;;  %652 = vmatpush1.bf16.msra.mxu1 %v1001_v30  ;;  %v557_v0 = vlaneseq }
  0x87   : > { %653 = vmatprep.subr.bf16.mxu1 %v1006_v31 }
  0x88   : > { %v558_v1 = vshrl.u32 %v557_v0, 7 }
  0x89   : > { %902 = vmatpush3.bf16.msra.mxu0 %v994_v26 }
  0x8a   : > { %654 = vmatpush1.bf16.msra.mxu1 %v1004_v32  ;;  %v559_v2 = vsub.s32 0, %v558_v1  ;;  %v563_v4 = vsub.s32 1, %v558_v1 }
  0x8b   : > { %655 = vmatprep.subr.bf16.mxu1 %v1009_v33 }
  0x8c   : > { %904 = vmatmul.mubr.msk.bf16.vlgmr.msra.gmra.mrb[4].mxu0 %vm336_vm4, %v294_v28  ;;  %v560_v5 = vrot.slane %v555_v3, %v559_v2  ;;  %v564_v6 = vrot.slane %v555_v3, %v563_v4 }
  0x8e   : > { %656 = vmatpush1.bf16.msra.mxu1 %v1007_v34 }
  0x8f   : > { %657 = vmatprep.subr.bf16.mxu1 %v1012_v35 }
  0x92   : > { %658 = vmatpush1.bf16.msra.mxu1 %v1010_v36 }
  0x93   : > { %659 = vmatprep.subr.bf16.mxu1 %v1015_v37 }
  0x96   : > { %660 = vmatpush1.bf16.msra.mxu1 %v1013_v38 }
  0x97   : > { %661 = vmatprep.subr.bf16.mxu1 %v1018_v39 }
  0x9a   : > { %662 = vmatpush1.bf16.msra.mxu1 %v1016_v40 }
 0x14f   : > { %v373_v42 = vpop.f32.mrb[0].mxu0  ;;  %v441_v43 = vpop.f32.mrb[0].mxu1 }
 0x150   : > { %v881_v44 = vpop.f32.mrb[1].mxu0  ;;  %v442_v45 = vadd.f32 %v441_v43, %v373_v42  ;;  %v893_v46 = vpop.f32.mrb[1].mxu1 }
 0x151   : > { %v376_v47 = vpop.f32.mrb[2].mxu0  ;;  %v444_v48 = vpop.f32.mrb[2].mxu1 }
 0x152   : > { %v882_v49 = vpop.f32.mrb[3].mxu0  ;;  %v445_v50 = vadd.f32 %v444_v48, %v376_v47  ;;  %v894_v51 = vpop.f32.mrb[3].mxu1 }
 0x15f   : > { %v518_v52 = vpop.f32.mrb[4].mxu0 }
 0x160   : > { %v525_v54 = vadd.f32 %v518_v52, %v442_v45  ;;  %v905_v55 = vpop.f32.mrb[5].mxu0 }
 0x161   : > { %v521_v56 = vpop.f32.mrb[6].mxu0 }
 0x162   : > { %v534_v57 = vadd.f32 %v832_v53, %v525_v54  ;;  %v526_v58 = vadd.f32 %v521_v56, %v445_v50  ;;  %v906_v59 = vpop.f32.mrb[7].mxu0 }
 0x164   : > { %v535_v60 = vadd.f32 %v832_v53, %v526_v58  ;;  %v536_v61 = vmax.f32 %v534_v57, 0.0 }
 0x166   : > { %v537_v62 = vmax.f32 %v535_v60, 0.0 }
 0x168   : > { %v538_v63 = vpack.c.bf16 %v537_v62, %v536_v61 }
 0x16a   : > { %680 = vmatmul.mubr.bf16.vlgmr.msra.gmra.mrb[4].mxu1 %v538_v63 }
 0x23d   : > { %v681_v7 = vpop.f32.mrb[4].mxu1 }
 0x23e   : > { %v682_v8 = vadd.f32 %v681_v7, %v560_v5  ;;  %v683_v9 = vpop.f32.mrb[5].mxu1 }
 0x23f   : > { %v684_v10 = vadd.f32 %v683_v9, %v564_v6  ;;  %v685_v11 = vpop.f32.mrb[6].mxu1 }
 0x240   : > { %v690_v12 = vmax.f32 %v682_v8, 0.0  ;;  %v686_v13 = vadd.f32 %v685_v11, %v560_v5  ;;  %v687_v14 = vpop.f32.mrb[7].mxu1 }
 0x241   : > { %v691_v15 = vmax.f32 %v684_v10, 0.0  ;;  %v688_v16 = vadd.f32 %v687_v14, %v564_v6 }
 0x242   : > { %694 = vst [vmem:[%s271_s28] sm:$0xff] %v690_v12  ;;  %v692_v17 = vmax.f32 %v686_v13, 0.0 }
 0x243   : > { %695 = vst [vmem:[%s271_s28 + $0x8] sm:$0xff] %v691_v15  ;;  %v693_v18 = vmax.f32 %v688_v16, 0.0 }
 0x244   : > { %696 = vst [vmem:[%s271_s28 + $0x10] sm:$0xff] %v692_v17 }
 0x245   : > { %697 = vst [vmem:[%s271_s28 + $0x18] sm:$0xff] %v693_v18 }
 0x246   : > { %1118 = shalt.err (!%p1115_p2)
}
 0x247   : > { %s1119_s24 = scalar_lea.hbm %s1450_s23, 512  ;;  %s1123_s13 = scalar_lea.hbm %s1499_s5, 1024 }
 0x248   : > { %p1120_p13 = scmp.ne.s32.totalorder %s1450_s23, %s1119_s24  ;;  %p1124_p4 = scmp.lt.u32.totalorder %s1450_s23, %s1499_s5 }
 0x249   : > { %p1125_p7 = scmp.lt.u32.totalorder %s1123_s13, %s1119_s24  ;;  %p1127_p8 = scmp.lt.u32.totalorder %s1119_s24, %s1450_s23 }
 0x24a   : > { %p1121_p6 = pnand %p1120_p13, %p1515_p0 }
 0x24b   : > { %p1126_p11 = por %p1125_p7, %p1124_p4 }
 0x24c   : > { %p1122_p10 = pneg %p1121_p6 }
 0x24d   : > { %p1128_p1 = por %p1127_p8, %p1126_p11 }
 0x24f   : > { %p1129_p3 = pnand %p1128_p1, %p1122_p10 }
 0x251   : > { %1132 = shalt.err (!%p1129_p3)
}
 0x252   : > { %s1188_s15 = smov 256   ;;  %s1189_s30 = smov 16  }
 0x253   : > { %917 = dma.vmem_to_hbm [thread:$0]  (%p1515_p0), %s1445_s14, 512, %s1450_s23, %s699_s22, %s1188_s15, %s1188_s15, %s1189_s30  }
 0x254 PF: > { %s727_s11 = sand.u32 1, %s1163_s18   ;;  %p1516_p5 = scmp.ne.s32.totalorder %s1504_s25, 0 }
 0x255   : > { %p1517_p9 = scmp.ge.s32.totalorder %s1175_s21, 2  ;;  %s728_s7 = scalar_lea.sflag [#allocation4], %s727_s11 }
 0x257   : > { %p931_p12 = pnand %p1517_p9, %p1516_p5 }
 0x259   : > { %1158 = dma.done.wait (!%p931_p12), %s728_s7, 512  }
 0x25a   : > { %1160 = vsyncadd (!%p931_p12), %s728_s7, 4294966784  ;;  %p19_p2 = scmp.ge.s32.totalorder %s1333_s16, 4   ;;  %s1518_s18 = smov %s1167_s19 }
 0x25b   : > { %s1519_s19 = smov %s1171_s20  ;;  %s1520_s20 = smov %s1342_s27 }
 0x25c   : > { %s1521_s21 = smov %s1333_s16  ;;  %21 = sbr.rel (!%p19_p2) target bundleno = 6 (0x6), region = 95 }
 0x263   :  { %733 = vsyncpa [#allocation3], 1 }
 0x264   :  { %735 = vsyncpa [#allocation3 + $0x1], 1 }
 0x265   :  { %736 = vsyncpa [#allocation6], 1 }
 0x266   :  { %737 = vsyncpa [#allocation4], 1 }
 0x267   :  { %739 = vsyncpa [#allocation4 + $0x1], 1 }

</bundles_post_ra>
